<compile_context>
chip_gen: v5e
topology: v5e:2x2
jax: 0.10.0
libtpu: 0.0.40
codegen_flags: <defaults>
</compile_context>

<pallas_src>
import functools

import jax
import jax.numpy as jnp
from jax.experimental import pallas as pl
from jax.experimental.pallas import tpu as pltpu

_LANES = 128
_TILE_ROWS = 8192     # 8192 * 128 * 4 B = 4 MiB per f32 input block.
_CHUNK_ROWS = 1024    # in-kernel sub-chunk; bounds VMEM temporaries / vreg live ranges.


def _default_num_cores():
    """2 TensorCores per chip on v7x; 1 on v5e / v6e (and unknown backends)."""
    try:
        kind = jax.devices()[0].device_kind.lower()
    except Exception:
        return 1
    return 2 if "v7" in kind else 1


def _sublane(dtype):
    return {4: 8, 2: 16, 1: 32}.get(jnp.dtype(dtype).itemsize, 8)


def _wmse_reduce_kernel(p_ref, t_ref, w_ref, o_ref, *,
                        tile_rows, tiles_per_core, rows_total, chunk_rows,
                        guard_full, emit_partial):
    """Accumulate per-lane partial reductions into this core's (4, 128) slab.

    Slab rows: 0: sum(scale where weights > 0)   1: count(weights > 0)
               2: sum(scale)                     3: max(|scale|)  (any-nonzero probe)
    """
    c = pl.program_id(0)          # core slab index ("parallel")
    i = pl.program_id(1)          # tile index within this core ("arbitrary")

    @pl.when(i == 0)
    def _init():
        o_ref[...] = jnp.zeros_like(o_ref)

    # Intended (unclamped) global start row of this tile.  The input index_map
    # clamps the DMA so it never starts out of bounds; tiles whose intended
    # rows fall outside the slab are skipped entirely, and the (single)
    # partial tile masks its out-of-bounds rows.
    row0 = (c * tiles_per_core + i) * tile_rows

    def partials(p, t, w, valid):
        p = p.astype(jnp.float32)
        t = t.astype(jnp.float32)
        w = w.astype(jnp.float32)
        diff = p - t
        scale = w * diff * diff                    # weights * (pred - target)^2
        pos = w > 0                                # torch.gt(weights, 0)
        if valid is not None:                      # masked (tail) path only
            pos = jnp.logical_and(pos, valid)
            scale = jnp.where(valid, scale, 0.0)   # where(): garbage/NaN safe
        masked = jnp.where(pos, scale, 0.0)
        pos_f = pos.astype(jnp.float32)
        return (jnp.sum(masked, axis=0, keepdims=True),
                jnp.sum(pos_f, axis=0, keepdims=True),
                jnp.sum(scale, axis=0, keepdims=True),
                jnp.max(jnp.abs(scale), axis=0, keepdims=True))

    def accumulate(mask_rows):
        nchunks = tile_rows // chunk_rows
        rem = tile_rows % chunk_rows

        def chunk_vals(start, size):
            valid = None
            if mask_rows:
                rid = row0 + start + jax.lax.broadcasted_iota(
                    jnp.int32, (size, _LANES), 0)
                valid = rid < rows_total
            sl = pl.ds(start, size)
            return partials(p_ref[sl, :], t_ref[sl, :], w_ref[sl, :], valid)

        zero = jnp.zeros((1, _LANES), jnp.float32)
        carry = (zero, zero, zero, zero)

        if nchunks > 0:
            def body(j, acc):
                s0, s1, s2, s3 = acc
                start = pl.multiple_of(j * chunk_rows, chunk_rows)
                a0, a1, a2, a3 = chunk_vals(start, chunk_rows)
                return (s0 + a0, s1 + a1, s2 + a2, jnp.maximum(s3, a3))
            carry = jax.lax.fori_loop(0, nchunks, body, carry)

        if rem:
            a0, a1, a2, a3 = chunk_vals(nchunks * chunk_rows, rem)
            s0, s1, s2, s3 = carry
            carry = (s0 + a0, s1 + a1, s2 + a2, jnp.maximum(s3, a3))

        s0, s1, s2, s3 = carry
        o_ref[0:1, :] += s0
        o_ref[1:2, :] += s1
        o_ref[2:3, :] += s2
        o_ref[3:4, :] = jnp.maximum(o_ref[3:4, :], s3)

    if guard_full:
        full = row0 + tile_rows <= rows_total

        @pl.when(full)
        def _fast():
            accumulate(mask_rows=False)

        if emit_partial:
            is_partial = jnp.logical_and(row0 < rows_total,
                                         jnp.logical_not(full))

            @pl.when(is_partial)
            def _tail():
                accumulate(mask_rows=True)
    else:
        accumulate(mask_rows=False)


def _reductions(pred, target, weights, *, tile_rows=None, num_cores=None):
    """Pallas reduction; returns (sum_masked, cnt_pos, sum_all, max_abs, numel)."""
    if tile_rows is None:
        tile_rows = _TILE_ROWS
    if num_cores is None:
        num_cores = _default_num_cores()

    n = pred.size
    sub = max(_sublane(pred.dtype), _sublane(target.dtype), _sublane(weights.dtype))
    rows = pl.cdiv(n, _LANES)
    rows_padded = ((rows + sub - 1) // sub) * sub   # sublane-align the slab
    pad = rows_padded * _LANES - n                  # 0 for typical MTLSD shapes

    def _prep(x):
        flat = jnp.ravel(x)                         # free for contiguous inputs
        if pad:
            # TODO(synk): only for awkward sizes (numel not sublane-aligned);
            # costs one extra HBM pass there.  Padded zeros are inert.
            flat = jnp.pad(flat, (0, pad))
        return flat.reshape(rows_padded, _LANES)    # free reshape when pad == 0

    p2, t2, w2 = _prep(pred), _prep(target), _prep(weights)

    tile = min(tile_rows, rows_padded)              # multiple of `sub` by construction
    num_tiles = pl.cdiv(rows_padded, tile)
    num_cores = max(1, min(num_cores, num_tiles))
    tiles_per_core = pl.cdiv(num_tiles, num_cores)

    exact = num_cores * tiles_per_core == num_tiles  # no clamp-duplicated tiles
    has_partial = (rows_padded % tile) != 0          # at most one partial tile

    def in_map(c, i):
        g = c * tiles_per_core + i
        if not exact:
            g = jnp.minimum(g, num_tiles - 1)        # duplicated tile: compute skipped
        return (g, 0)

    kernel = functools.partial(
        _wmse_reduce_kernel,
        tile_rows=tile, tiles_per_core=tiles_per_core, rows_total=rows_padded,
        chunk_rows=_CHUNK_ROWS,
        guard_full=(not exact) or has_partial, emit_partial=has_partial)

    out = pl.pallas_call(
        kernel,
        out_shape=jax.ShapeDtypeStruct((4, num_cores * _LANES), jnp.float32),
        grid_spec=pltpu.PrefetchScalarGridSpec(
            num_scalar_prefetch=0,
            grid=(num_cores, tiles_per_core),
            in_specs=[
                pl.BlockSpec((tile, _LANES), in_map),
                pl.BlockSpec((tile, _LANES), in_map),
                pl.BlockSpec((tile, _LANES), in_map),
            ],
            out_specs=pl.BlockSpec((4, _LANES), lambda c, i: (0, c)),
        ),
        compiler_params=pltpu.CompilerParams(
            dimension_semantics=("parallel", "arbitrary"),
            vmem_limit_bytes=40 * 1024 * 1024,
        ),
    )(p2, t2, w2)

    sum_masked = jnp.sum(out[0])
    cnt_pos = jnp.sum(out[1])      # f32 counts: exact up to 2^24 per lane
    sum_all = jnp.sum(out[2])
    max_abs = jnp.max(out[3])
    return sum_masked, cnt_pos, sum_all, max_abs, n


def _calc_loss(pred, target, weights, *, tile_rows=None, num_cores=None):
    sum_masked, cnt_pos, sum_all, max_abs, numel = _reductions(
        pred, target, weights, tile_rows=tile_rows, num_cores=num_cores)
    # torch.mean(masked_select(scale, weights > 0)); if cnt_pos == 0 while some
    # scale != 0 (only possible with negative weights) this is 0/0 = NaN, which
    # matches PyTorch's mean of an empty selection.
    masked_mean = sum_masked / cnt_pos
    plain_mean = sum_all / jnp.float32(numel)       # torch.mean(scale) branch
    return jnp.where(max_abs > 0.0, masked_mean, plain_mean)


@jax.jit
def weighted_mse_loss(lsds_prediction, lsds_target, lsds_weights,
                      affs_prediction, affs_target, affs_weights):
    lsds_loss = _calc_loss(lsds_prediction, lsds_target, lsds_weights)
    affs_loss = _calc_loss(affs_prediction, affs_target, affs_weights)
    return lsds_loss + affs_loss


if __name__ == "__main__":
    key = jax.random.PRNGKey(0)
    k = jax.random.split(key, 8)

    # MTLSD 3D dense: lsds have 10 channels, affs have 3 channels (NCDHW).
    B, D, H, W = 2, 8, 8, 8
    lsds_shape = (B, 10, D, H, W)
    affs_shape = (B, 3, D, H, W)

    lsds_pred = jax.random.uniform(k[0], lsds_shape, jnp.float32)
    lsds_tgt = jax.random.uniform(k[1], lsds_shape, jnp.float32)
    lsds_w = jnp.where(jax.random.uniform(k[2], lsds_shape) > 0.5,
                       jax.random.uniform(k[2], lsds_shape, jnp.float32), 0.0)

    affs_pred = jax.random.uniform(k[3], affs_shape, jnp.float32)
    affs_tgt = jax.random.uniform(k[4], affs_shape, jnp.float32)
    affs_w = jnp.where(jax.random.uniform(k[5], affs_shape) > 0.5,
                       jax.random.uniform(k[5], affs_shape, jnp.float32), 0.0)

    loss = weighted_mse_loss(lsds_pred, lsds_tgt, lsds_w,
                             affs_pred, affs_tgt, affs_w)
    jax.block_until_ready(loss)

    # Pure-JAX reference with the exact PyTorch semantics (no denominator clamp).
    def ref_calc(p, t, w):
        scale = w * (p - t) ** 2
        has_nz = jnp.any(scale != 0)
        pos = w > 0
        masked_mean = (jnp.sum(jnp.where(pos, scale, 0.0))
                       / jnp.sum(pos.astype(jnp.float32)))
        return jnp.where(has_nz, masked_mean, jnp.mean(scale))

    ref = ref_calc(lsds_pred, lsds_tgt, lsds_w) + ref_calc(affs_pred, affs_tgt, affs_w)
    assert jnp.allclose(loss, ref, rtol=1e-5, atol=1e-5), (loss, ref)

    # Stress the multi-tile / chunk-loop / partial-tile / clamped-duplicate /
    # dual-core-grid paths that the tiny demo shapes don't reach (the 2-core
    # grid simply runs serially on single-TensorCore chips).
    n = 168955                                      # not a multiple of 128 -> pad path
    ks = jax.random.split(k[6], 4)
    sp_ = jax.random.uniform(ks[0], (n,), jnp.float32)
    st_ = jax.random.uniform(ks[1], (n,), jnp.float32)
    w_mag = jax.random.uniform(ks[2], (n,), jnp.float32)
    gate = jax.random.uniform(ks[3], (n,), jnp.float32)
    sw_ = jnp.where(gate > 0.6, w_mag, jnp.where(gate < 0.05, -w_mag, 0.0))
    ref_s = ref_calc(sp_, st_, sw_)
    for tr, nc in ((1040, 2), (448, 2), (8192, 1)):
        got = _calc_loss(sp_, st_, sw_, tile_rows=tr, num_cores=nc)
        got = jax.block_until_ready(got)
        assert jnp.allclose(got, ref_s, rtol=1e-4, atol=1e-5), (tr, nc, got, ref_s)

    print("KERNEL_OK")
</pallas_src>

<mosaic_0001>
module attributes {stable_mosaic.version = 11 : i64} {
  func.func @_wmse_reduce_kernel(%arg0: i32, %arg1: i32, %arg2: memref<80x128xf32, #tpu.memory_space<vmem>>, %arg3: memref<80x128xf32, #tpu.memory_space<vmem>>, %arg4: memref<80x128xf32, #tpu.memory_space<vmem>>, %arg5: memref<4x128xf32, #tpu.memory_space<vmem>>) attributes {dimension_semantics = [#tpu.dimension_semantics<parallel>, #tpu.dimension_semantics<arbitrary>], iteration_bounds = array<i64: 1, 1>, scalar_prefetch = 0 : i64, scratch_operands = 0 : i64, tpu.core_type = #tpu.core_type<tc>, window_params = [{transform_indices = @transform_0, window_bounds = array<i64: 80, 128>}, {transform_indices = @transform_1, window_bounds = array<i64: 80, 128>}, {transform_indices = @transform_2, window_bounds = array<i64: 80, 128>}, {transform_indices = @transform_3, window_bounds = array<i64: 4, 128>}]} {
    %c0_i32 = arith.constant 0 : i32
    %0 = arith.cmpi eq, %arg1, %c0_i32 : i32
    %1 = arith.extui %0 : i1 to i32
    %c0_i32_0 = arith.constant 0 : i32
    %2 = arith.cmpi ne, %1, %c0_i32_0 : i32
    scf.if %2 {
      %cst_25 = arith.constant 0.000000e+00 : f32
      %41 = vector.broadcast %cst_25 : f32 to vector<4x128xf32>
      %c0_26 = arith.constant 0 : index
      %c0_27 = arith.constant 0 : index
      %42 = vector.load %arg5[%c0_26, %c0_27] : memref<4x128xf32, #tpu.memory_space<vmem>>, vector<4x128xf32>
      tpu.vector_store %arg5[%c0_26, %c0_27], %41 {strides = array<i32>} : memref<4x128xf32, #tpu.memory_space<vmem>>, vector<4x128xf32>,
    } else {
    }
    %cst = arith.constant 0.000000e+00 : f32
    %3 = vector.broadcast %cst : f32 to vector<1x128xf32>
    %c0 = arith.constant 0 : index
    %c0_1 = arith.constant 0 : index
    %4 = vector.load %arg2[%c0, %c0_1] : memref<80x128xf32, #tpu.memory_space<vmem>>, vector<80x128xf32>
    %c0_2 = arith.constant 0 : index
    %c0_3 = arith.constant 0 : index
    %5 = vector.load %arg3[%c0_2, %c0_3] : memref<80x128xf32, #tpu.memory_space<vmem>>, vector<80x128xf32>
    %c0_4 = arith.constant 0 : index
    %c0_5 = arith.constant 0 : index
    %6 = vector.load %arg4[%c0_4, %c0_5] : memref<80x128xf32, #tpu.memory_space<vmem>>, vector<80x128xf32>
    %7 = arith.subf %4, %5 : vector<80x128xf32>
    %8 = arith.mulf %6, %7 : vector<80x128xf32>
    %9 = arith.mulf %8, %7 : vector<80x128xf32>
    %cst_6 = arith.constant 0.000000e+00 : f32
    %10 = vector.broadcast %cst_6 : f32 to vector<80x128xf32>
    %11 = arith.cmpf ogt, %6, %10 : vector<80x128xf32>
    %cst_7 = arith.constant 0.000000e+00 : f32
    %12 = vector.broadcast %cst_7 : f32 to vector<80x128xf32>
    %13 = arith.select %11, %9, %12 : vector<80x128xi1>, vector<80x128xf32>
    %14 = arith.extui %11 : vector<80x128xi1> to vector<80x128xi32>
    %15 = arith.sitofp %14 : vector<80x128xi32> to vector<80x128xf32>
    %cst_8 = arith.constant dense<0.000000e+00> : vector<128xf32>
    %16 = vector.multi_reduction <add>, %13, %cst_8 [0] : vector<80x128xf32> to vector<128xf32>
    %17 = vector.shape_cast %16 : vector<128xf32> to vector<1x128xf32>
    %cst_9 = arith.constant dense<0.000000e+00> : vector<128xf32>
    %18 = vector.multi_reduction <add>, %15, %cst_9 [0] : vector<80x128xf32> to vector<128xf32>
    %19 = vector.shape_cast %18 : vector<128xf32> to vector<1x128xf32>
    %cst_10 = arith.constant dense<0.000000e+00> : vector<128xf32>
    %20 = vector.multi_reduction <add>, %9, %cst_10 [0] : vector<80x128xf32> to vector<128xf32>
    %21 = vector.shape_cast %20 : vector<128xf32> to vector<1x128xf32>
    %22 = math.absf %9 : vector<80x128xf32>
    %cst_11 = arith.constant dense<0xFF800000> : vector<128xf32>
    %23 = vector.multi_reduction <maximumf>, %22, %cst_11 [0] : vector<80x128xf32> to vector<128xf32>
    %24 = vector.shape_cast %23 : vector<128xf32> to vector<1x128xf32>
    %25 = arith.addf %3, %17 : vector<1x128xf32>
    %26 = arith.addf %3, %19 : vector<1x128xf32>
    %27 = arith.addf %3, %21 : vector<1x128xf32>
    %28 = arith.maximumf %3, %24 : vector<1x128xf32>
    %c0_12 = arith.constant 0 : index
    %c0_13 = arith.constant 0 : index
    %29 = vector.load %arg5[%c0_12, %c0_13] : memref<4x128xf32, #tpu.memory_space<vmem>>, vector<1x128xf32>
    %30 = arith.addf %29, %25 : vector<1x128xf32>
    %c0_14 = arith.constant 0 : index
    %c0_15 = arith.constant 0 : index
    %31 = vector.load %arg5[%c0_14, %c0_15] : memref<4x128xf32, #tpu.memory_space<vmem>>, vector<1x128xf32>
    tpu.vector_store %arg5[%c0_14, %c0_15], %30 {strides = array<i32>} : memref<4x128xf32, #tpu.memory_space<vmem>>, vector<1x128xf32>,
    %c1 = arith.constant 1 : index
    %c0_16 = arith.constant 0 : index
    %32 = vector.load %arg5[%c1, %c0_16] : memref<4x128xf32, #tpu.memory_space<vmem>>, vector<1x128xf32>
    %33 = arith.addf %32, %26 : vector<1x128xf32>
    %c1_17 = arith.constant 1 : index
    %c0_18 = arith.constant 0 : index
    %34 = vector.load %arg5[%c1_17, %c0_18] : memref<4x128xf32, #tpu.memory_space<vmem>>, vector<1x128xf32>
    tpu.vector_store %arg5[%c1_17, %c0_18], %33 {strides = array<i32>} : memref<4x128xf32, #tpu.memory_space<vmem>>, vector<1x128xf32>,
    %c2 = arith.constant 2 : index
    %c0_19 = arith.constant 0 : index
    %35 = vector.load %arg5[%c2, %c0_19] : memref<4x128xf32, #tpu.memory_space<vmem>>, vector<1x128xf32>
    %36 = arith.addf %35, %27 : vector<1x128xf32>
    %c2_20 = arith.constant 2 : index
    %c0_21 = arith.constant 0 : index
    %37 = vector.load %arg5[%c2_20, %c0_21] : memref<4x128xf32, #tpu.memory_space<vmem>>, vector<1x128xf32>
    tpu.vector_store %arg5[%c2_20, %c0_21], %36 {strides = array<i32>} : memref<4x128xf32, #tpu.memory_space<vmem>>, vector<1x128xf32>,
    %c3 = arith.constant 3 : index
    %c0_22 = arith.constant 0 : index
    %38 = vector.load %arg5[%c3, %c0_22] : memref<4x128xf32, #tpu.memory_space<vmem>>, vector<1x128xf32>
    %39 = arith.maximumf %38, %28 : vector<1x128xf32>
    %c3_23 = arith.constant 3 : index
    %c0_24 = arith.constant 0 : index
    %40 = vector.load %arg5[%c3_23, %c0_24] : memref<4x128xf32, #tpu.memory_space<vmem>>, vector<1x128xf32>
    tpu.vector_store %arg5[%c3_23, %c0_24], %39 {strides = array<i32>} : memref<4x128xf32, #tpu.memory_space<vmem>>, vector<1x128xf32>,
    return
  }
  func.func @transform_0(%arg0: i32, %arg1: i32) -> (i32, i32) {
    %c1_i32 = arith.constant 1 : i32
    %0 = arith.muli %arg0, %c1_i32 : i32
    %1 = arith.addi %0, %arg1 : i32
    %c0_i32 = arith.constant 0 : i32
    %c0_i32_0 = arith.constant 0 : i32
    return %1, %c0_i32 : i32, i32
  }
  func.func @transform_1(%arg0: i32, %arg1: i32) -> (i32, i32) {
    %c1_i32 = arith.constant 1 : i32
    %0 = arith.muli %arg0, %c1_i32 : i32
    %1 = arith.addi %0, %arg1 : i32
    %c0_i32 = arith.constant 0 : i32
    %c0_i32_0 = arith.constant 0 : i32
    return %1, %c0_i32 : i32, i32
  }
  func.func @transform_2(%arg0: i32, %arg1: i32) -> (i32, i32) {
    %c1_i32 = arith.constant 1 : i32
    %0 = arith.muli %arg0, %c1_i32 : i32
    %1 = arith.addi %0, %arg1 : i32
    %c0_i32 = arith.constant 0 : i32
    %c0_i32_0 = arith.constant 0 : i32
    return %1, %c0_i32 : i32, i32
  }
  func.func @transform_3(%arg0: i32, %arg1: i32) -> (i32, i32) {
    %c0_i32 = arith.constant 0 : i32
    %c0_i32_0 = arith.constant 0 : i32
    return %c0_i32, %arg0 : i32, i32
  }
}

module attributes {stable_mosaic.version = 11 : i64} {
  func.func @_wmse_reduce_kernel(%arg0: i32, %arg1: i32, %arg2: memref<24x128xf32, #tpu.memory_space<vmem>>, %arg3: memref<24x128xf32, #tpu.memory_space<vmem>>, %arg4: memref<24x128xf32, #tpu.memory_space<vmem>>, %arg5: memref<4x128xf32, #tpu.memory_space<vmem>>) attributes {dimension_semantics = [#tpu.dimension_semantics<parallel>, #tpu.dimension_semantics<arbitrary>], iteration_bounds = array<i64: 1, 1>, scalar_prefetch = 0 : i64, scratch_operands = 0 : i64, tpu.core_type = #tpu.core_type<tc>, window_params = [{transform_indices = @transform_0, window_bounds = array<i64: 24, 128>}, {transform_indices = @transform_1, window_bounds = array<i64: 24, 128>}, {transform_indices = @transform_2, window_bounds = array<i64: 24, 128>}, {transform_indices = @transform_3, window_bounds = array<i64: 4, 128>}]} {
    %c0_i32 = arith.constant 0 : i32
    %0 = arith.cmpi eq, %arg1, %c0_i32 : i32
    %1 = arith.extui %0 : i1 to i32
    %c0_i32_0 = arith.constant 0 : i32
    %2 = arith.cmpi ne, %1, %c0_i32_0 : i32
    scf.if %2 {
      %cst_25 = arith.constant 0.000000e+00 : f32
      %41 = vector.broadcast %cst_25 : f32 to vector<4x128xf32>
      %c0_26 = arith.constant 0 : index
      %c0_27 = arith.constant 0 : index
      %42 = vector.load %arg5[%c0_26, %c0_27] : memref<4x128xf32, #tpu.memory_space<vmem>>, vector<4x128xf32>
      tpu.vector_store %arg5[%c0_26, %c0_27], %41 {strides = array<i32>} : memref<4x128xf32, #tpu.memory_space<vmem>>, vector<4x128xf32>,
    } else {
    }
    %cst = arith.constant 0.000000e+00 : f32
    %3 = vector.broadcast %cst : f32 to vector<1x128xf32>
    %c0 = arith.constant 0 : index
    %c0_1 = arith.constant 0 : index
    %4 = vector.load %arg2[%c0, %c0_1] : memref<24x128xf32, #tpu.memory_space<vmem>>, vector<24x128xf32>
    %c0_2 = arith.constant 0 : index
    %c0_3 = arith.constant 0 : index
    %5 = vector.load %arg3[%c0_2, %c0_3] : memref<24x128xf32, #tpu.memory_space<vmem>>, vector<24x128xf32>
    %c0_4 = arith.constant 0 : index
    %c0_5 = arith.constant 0 : index
    %6 = vector.load %arg4[%c0_4, %c0_5] : memref<24x128xf32, #tpu.memory_space<vmem>>, vector<24x128xf32>
    %7 = arith.subf %4, %5 : vector<24x128xf32>
    %8 = arith.mulf %6, %7 : vector<24x128xf32>
    %9 = arith.mulf %8, %7 : vector<24x128xf32>
    %cst_6 = arith.constant 0.000000e+00 : f32
    %10 = vector.broadcast %cst_6 : f32 to vector<24x128xf32>
    %11 = arith.cmpf ogt, %6, %10 : vector<24x128xf32>
    %cst_7 = arith.constant 0.000000e+00 : f32
    %12 = vector.broadcast %cst_7 : f32 to vector<24x128xf32>
    %13 = arith.select %11, %9, %12 : vector<24x128xi1>, vector<24x128xf32>
    %14 = arith.extui %11 : vector<24x128xi1> to vector<24x128xi32>
    %15 = arith.sitofp %14 : vector<24x128xi32> to vector<24x128xf32>
    %cst_8 = arith.constant dense<0.000000e+00> : vector<128xf32>
    %16 = vector.multi_reduction <add>, %13, %cst_8 [0] : vector<24x128xf32> to vector<128xf32>
    %17 = vector.shape_cast %16 : vector<128xf32> to vector<1x128xf32>
    %cst_9 = arith.constant dense<0.000000e+00> : vector<128xf32>
    %18 = vector.multi_reduction <add>, %15, %cst_9 [0] : vector<24x128xf32> to vector<128xf32>
    %19 = vector.shape_cast %18 : vector<128xf32> to vector<1x128xf32>
    %cst_10 = arith.constant dense<0.000000e+00> : vector<128xf32>
    %20 = vector.multi_reduction <add>, %9, %cst_10 [0] : vector<24x128xf32> to vector<128xf32>
    %21 = vector.shape_cast %20 : vector<128xf32> to vector<1x128xf32>
    %22 = math.absf %9 : vector<24x128xf32>
    %cst_11 = arith.constant dense<0xFF800000> : vector<128xf32>
    %23 = vector.multi_reduction <maximumf>, %22, %cst_11 [0] : vector<24x128xf32> to vector<128xf32>
    %24 = vector.shape_cast %23 : vector<128xf32> to vector<1x128xf32>
    %25 = arith.addf %3, %17 : vector<1x128xf32>
    %26 = arith.addf %3, %19 : vector<1x128xf32>
    %27 = arith.addf %3, %21 : vector<1x128xf32>
    %28 = arith.maximumf %3, %24 : vector<1x128xf32>
    %c0_12 = arith.constant 0 : index
    %c0_13 = arith.constant 0 : index
    %29 = vector.load %arg5[%c0_12, %c0_13] : memref<4x128xf32, #tpu.memory_space<vmem>>, vector<1x128xf32>
    %30 = arith.addf %29, %25 : vector<1x128xf32>
    %c0_14 = arith.constant 0 : index
    %c0_15 = arith.constant 0 : index
    %31 = vector.load %arg5[%c0_14, %c0_15] : memref<4x128xf32, #tpu.memory_space<vmem>>, vector<1x128xf32>
    tpu.vector_store %arg5[%c0_14, %c0_15], %30 {strides = array<i32>} : memref<4x128xf32, #tpu.memory_space<vmem>>, vector<1x128xf32>,
    %c1 = arith.constant 1 : index
    %c0_16 = arith.constant 0 : index
    %32 = vector.load %arg5[%c1, %c0_16] : memref<4x128xf32, #tpu.memory_space<vmem>>, vector<1x128xf32>
    %33 = arith.addf %32, %26 : vector<1x128xf32>
    %c1_17 = arith.constant 1 : index
    %c0_18 = arith.constant 0 : index
    %34 = vector.load %arg5[%c1_17, %c0_18] : memref<4x128xf32, #tpu.memory_space<vmem>>, vector<1x128xf32>
    tpu.vector_store %arg5[%c1_17, %c0_18], %33 {strides = array<i32>} : memref<4x128xf32, #tpu.memory_space<vmem>>, vector<1x128xf32>,
    %c2 = arith.constant 2 : index
    %c0_19 = arith.constant 0 : index
    %35 = vector.load %arg5[%c2, %c0_19] : memref<4x128xf32, #tpu.memory_space<vmem>>, vector<1x128xf32>
    %36 = arith.addf %35, %27 : vector<1x128xf32>
    %c2_20 = arith.constant 2 : index
    %c0_21 = arith.constant 0 : index
    %37 = vector.load %arg5[%c2_20, %c0_21] : memref<4x128xf32, #tpu.memory_space<vmem>>, vector<1x128xf32>
    tpu.vector_store %arg5[%c2_20, %c0_21], %36 {strides = array<i32>} : memref<4x128xf32, #tpu.memory_space<vmem>>, vector<1x128xf32>,
    %c3 = arith.constant 3 : index
    %c0_22 = arith.constant 0 : index
    %38 = vector.load %arg5[%c3, %c0_22] : memref<4x128xf32, #tpu.memory_space<vmem>>, vector<1x128xf32>
    %39 = arith.maximumf %38, %28 : vector<1x128xf32>
    %c3_23 = arith.constant 3 : index
    %c0_24 = arith.constant 0 : index
    %40 = vector.load %arg5[%c3_23, %c0_24] : memref<4x128xf32, #tpu.memory_space<vmem>>, vector<1x128xf32>
    tpu.vector_store %arg5[%c3_23, %c0_24], %39 {strides = array<i32>} : memref<4x128xf32, #tpu.memory_space<vmem>>, vector<1x128xf32>,
    return
  }
  func.func @transform_0(%arg0: i32, %arg1: i32) -> (i32, i32) {
    %c1_i32 = arith.constant 1 : i32
    %0 = arith.muli %arg0, %c1_i32 : i32
    %1 = arith.addi %0, %arg1 : i32
    %c0_i32 = arith.constant 0 : i32
    %c0_i32_0 = arith.constant 0 : i32
    return %1, %c0_i32 : i32, i32
  }
  func.func @transform_1(%arg0: i32, %arg1: i32) -> (i32, i32) {
    %c1_i32 = arith.constant 1 : i32
    %0 = arith.muli %arg0, %c1_i32 : i32
    %1 = arith.addi %0, %arg1 : i32
    %c0_i32 = arith.constant 0 : i32
    %c0_i32_0 = arith.constant 0 : i32
    return %1, %c0_i32 : i32, i32
  }
  func.func @transform_2(%arg0: i32, %arg1: i32) -> (i32, i32) {
    %c1_i32 = arith.constant 1 : i32
    %0 = arith.muli %arg0, %c1_i32 : i32
    %1 = arith.addi %0, %arg1 : i32
    %c0_i32 = arith.constant 0 : i32
    %c0_i32_0 = arith.constant 0 : i32
    return %1, %c0_i32 : i32, i32
  }
  func.func @transform_3(%arg0: i32, %arg1: i32) -> (i32, i32) {
    %c0_i32 = arith.constant 0 : i32
    %c0_i32_0 = arith.constant 0 : i32
    return %c0_i32, %arg0 : i32, i32
  }
}

</mosaic_0001>

<bundles_post_ra>
// kernel: weighted_mse_loss.2
= control target key start
LH: loop header
LB: loop body
LE: loop exit
PB: predicated region body
PF: predicated region fallthrough
CT: control target
= control target key end

     0   :  { %v304_v0 = vmov 0.0   ;;  %s517_s3 = inlined_call_operand.vmem [shape: f32[4,128], index: 3, kind: output, shape index: {}]   ;;  %s518_s0 = inlined_call_operand.vmem [shape: f32[80,128], index: 0, kind: input, shape index: {}]   ;;  %s519_s1 = inlined_call_operand.vmem [shape: f32[80,128], index: 1, kind: input, shape index: {}]   ;;  %s520_s2 = inlined_call_operand.vmem [shape: f32[80,128], index: 2, kind: input, shape index: {}]  }
   0x1   :  { %84 = vst [vmem:[%s517_s3] sm:$0xf] %v304_v0  ;;  %v85_v1 = vld [vmem:[%s518_s0] sm:$0xff]  ;;  %v86_v2 = vld [vmem:[%s518_s0 + $0x8] sm:$0xff]  ;;  %v87_v3 = vld [vmem:[%s518_s0 + $0x10] sm:$0xff] }
   0x2   :  { %v88_v4 = vld [vmem:[%s518_s0 + $0x18] sm:$0xff]  ;;  %v89_v5 = vld [vmem:[%s518_s0 + $0x20] sm:$0xff]  ;;  %v90_v6 = vld [vmem:[%s518_s0 + $0x28] sm:$0xff] }
   0x3   :  { %v91_v7 = vld [vmem:[%s518_s0 + $0x30] sm:$0xff]  ;;  %v92_v8 = vld [vmem:[%s518_s0 + $0x38] sm:$0xff]  ;;  %v93_v9 = vld [vmem:[%s518_s0 + $0x40] sm:$0xff] }
   0x4   :  { %v94_v10 = vld [vmem:[%s518_s0 + $0x48] sm:$0xff]  ;;  %v95_v11 = vld [vmem:[%s519_s1] sm:$0xff]  ;;  %v97_v13 = vld [vmem:[%s519_s1 + $0x10] sm:$0xff] }
   0x5   :  { %v96_v12 = vld [vmem:[%s519_s1 + $0x8] sm:$0xff]  ;;  %v98_v14 = vld [vmem:[%s519_s1 + $0x18] sm:$0xff]  ;;  %v99_v15 = vld [vmem:[%s519_s1 + $0x20] sm:$0xff]  ;;  %v115_v16 = vsub.f32 %v85_v1, %v95_v11  ;;  %v117_v21 = vsub.f32 %v87_v3, %v97_v13 }
   0x6   :  { %v116_v17 = vsub.f32 %v86_v2, %v96_v12  ;;  %v100_v18 = vld [vmem:[%s519_s1 + $0x28] sm:$0xff]  ;;  %v101_v19 = vld [vmem:[%s519_s1 + $0x30] sm:$0xff]  ;;  %v102_v20 = vld [vmem:[%s519_s1 + $0x38] sm:$0xff]  ;;  %v118_v22 = vsub.f32 %v88_v4, %v98_v14  ;;  %v119_v23 = vsub.f32 %v89_v5, %v99_v15 }
   0x7   :  { %v103_v24 = vld [vmem:[%s519_s1 + $0x40] sm:$0xff]  ;;  %v104_v25 = vld [vmem:[%s519_s1 + $0x48] sm:$0xff]  ;;  %v120_v27 = vsub.f32 %v90_v6, %v100_v18  ;;  %v121_v28 = vsub.f32 %v91_v7, %v101_v19  ;;  %v122_v29 = vsub.f32 %v92_v8, %v102_v20  ;;  %v107_v31 = vld [vmem:[%s520_s2 + $0x10] sm:$0xff] }
   0x8   :  { %v105_v26 = vld [vmem:[%s520_s2] sm:$0xff]  ;;  %v106_v30 = vld [vmem:[%s520_s2 + $0x8] sm:$0xff]  ;;  %v108_v32 = vld [vmem:[%s520_s2 + $0x18] sm:$0xff]  ;;  %v123_v37 = vsub.f32 %v93_v9, %v103_v24  ;;  %v124_v38 = vsub.f32 %v94_v10, %v104_v25  ;;  %v127_v40 = vmul.f32 %v117_v21, %v107_v31  ;;  %vm147_vm2 = vcmp.gt.f32.partialorder %v107_v31, 0.0 }
   0x9   :  { %v125_v33 = vmul.f32 %v115_v16, %v105_v26  ;;  %v109_v34 = vld [vmem:[%s520_s2 + $0x20] sm:$0xff]  ;;  %v110_v35 = vld [vmem:[%s520_s2 + $0x28] sm:$0xff]  ;;  %v410_v36 = vld [vmem:[%s520_s2 + $0x30] sm:$0xff]  ;;  %v126_v39 = vmul.f32 %v116_v17, %v106_v30  ;;  %v128_v44 = vmul.f32 %v118_v22, %v108_v32  ;;  %vm145_vm0 = vcmp.gt.f32.partialorder %v105_v26, 0.0 }
   0xa   :  { %v415_v41 = vld [vmem:[%s520_s2 + $0x38] sm:$0xff]  ;;  %v420_v42 = vld [vmem:[%s520_s2 + $0x40] sm:$0xff]  ;;  %v425_v43 = vld [vmem:[%s520_s2 + $0x48] sm:$0xff]  ;;  %v129_v45 = vmul.f32 %v119_v23, %v109_v34  ;;  %v130_v46 = vmul.f32 %v120_v27, %v110_v35  ;;  %v131_v47 = vmul.f32 %v121_v28, %v410_v36  ;;  %v137_v53 = vmul.f32 %v127_v40, %v117_v21 }
   0xb   :  { %v132_v48 = vmul.f32 %v122_v29, %v415_v41  ;;  %v135_v49 = vmul.f32 %v125_v33, %v115_v16  ;;  %v136_v50 = vmul.f32 %v126_v39, %v116_v17  ;;  %v133_v51 = vmul.f32 %v123_v37, %v420_v42 }
   0xc   :  { %v134_v52 = vmul.f32 %v124_v38, %v425_v43  ;;  %vm146_vm1 = vcmp.gt.f32.partialorder %v106_v30, 0.0  ;;  %v138_v54 = vmul.f32 %v128_v44, %v118_v22  ;;  %v139_v55 = vmul.f32 %v129_v45, %v119_v23 }
   0xd   :  { %v140_v56 = vmul.f32 %v130_v46, %v120_v27  ;;  %v431_v57 = vmul.f32 %v131_v47, %v121_v28  ;;  %v433_v58 = vmul.f32 %v132_v48, %v122_v29  ;;  %vm148_vm3 = vcmp.gt.f32.partialorder %v108_v32, 0.0 }
   0xe   :  { %vm149_vm4 = vcmp.gt.f32.partialorder %v109_v34, 0.0  ;;  %vm150_vm5 = vcmp.gt.f32.partialorder %v110_v35, 0.0  ;;  %v155_v59 = vsel %vm145_vm0, %v135_v49, 0.0  ;;  %v156_v60 = vsel %vm146_vm1, %v136_v50, 0.0 }
   0xf   :  { %v437_v61 = vmul.f32 %v133_v51, %v123_v37  ;;  %v439_v62 = vmul.f32 %v134_v52, %v124_v38  ;;  %vm151_vm6 = vcmp.gt.f32.partialorder %v410_v36, 0.0  ;;  %v157_v63 = vsel %vm147_vm2, %v137_v53, 0.0 }
  0x10   :  { %vm152_vm7 = vcmp.gt.f32.partialorder %v415_v41, 0.0  ;;  %vm153_vm8 = vcmp.gt.f32.partialorder %v420_v42, 0.0  ;;  %v185_v1 = vadd.f32 %v156_v60, %v155_v59  ;;  %v293_v2 = vsel %vm145_vm0, 1.0, %v304_v0 }
  0x11   :  { %v158_v3 = vsel %vm148_vm3, %v138_v54, 0.0  ;;  %v159_v4 = vsel %vm149_vm4, %v139_v55, 0.0  ;;  %v160_v5 = vsel %vm150_vm5, %v140_v56, 0.0  ;;  %v294_v6 = vsel %vm146_vm1, 1.0, %v304_v0 }
  0x12   :  { %vm154_vm9 = vcmp.gt.f32.partialorder %v425_v43, 0.0  ;;  %v161_v7 = vsel %vm151_vm6, %v431_v57, 0.0  ;;  %v186_v8 = vadd.f32 %v185_v1, %v157_v63  ;;  %v295_v9 = vsel %vm147_vm2, 1.0, %v304_v0 }
  0x13   :  { %v296_v10 = vsel %vm148_vm3, 1.0, %v304_v0  ;;  %v297_v11 = vsel %vm149_vm4, 1.0, %v304_v0  ;;  %v298_v12 = vsel %vm150_vm5, 1.0, %v304_v0  ;;  %v200_v13 = vadd.f32 %v294_v6, %v293_v2 }
  0x14   :  { %v215_v14 = vadd.f32 %v136_v50, %v135_v49  ;;  %v187_v15 = vadd.f32 %v186_v8, %v158_v3  ;;  %v230_v16 = vand.u32 2147483647, %v135_v49  ;;  %v231_v17 = vand.u32 2147483647, %v136_v50 }
  0x15   :  { %v232_v18 = vand.u32 2147483647, %v137_v53  ;;  %v201_v19 = vadd.f32 %v295_v9, %v200_v13  ;;  %v233_v21 = vand.u32 2147483647, %v138_v54  ;;  %v234_v22 = vand.u32 2147483647, %v139_v55 }
  0x16   :  { %v216_v20 = vadd.f32 %v215_v14, %v137_v53  ;;  %v188_v23 = vadd.f32 %v187_v15, %v159_v4  ;;  %v235_v24 = vand.u32 2147483647, %v140_v56  ;;  %v236_v25 = vand.u32 2147483647, %v431_v57 }
  0x17   :  { %v237_v26 = vand.u32 2147483647, %v433_v58  ;;  %v202_v27 = vadd.f32 %v296_v10, %v201_v19  ;;  %v238_v29 = vand.u32 2147483647, %v437_v61  ;;  %v239_v30 = vand.u32 2147483647, %v439_v62 }
  0x18   :  { %v217_v28 = vadd.f32 %v216_v20, %v138_v54  ;;  %v189_v31 = vadd.f32 %v188_v23, %v160_v5  ;;  %v240_v32 = vmax.f32 %v230_v16, %v234_v22  ;;  %v241_v33 = vmax.f32 %v231_v17, %v235_v24  ;;  %v268_v20 = vld [vmem:[%s517_s3 + $0x3] sm:$0x1] }
  0x19   :  { %v242_v34 = vmax.f32 %v232_v18, %v236_v25  ;;  %v162_v35 = vsel %vm152_vm7, %v433_v58, 0.0  ;;  %v203_v37 = vadd.f32 %v297_v11, %v202_v27  ;;  %v243_v39 = vmax.f32 %v233_v21, %v237_v26  ;;  %v262_v26 = vld [vmem:[%s517_s3 + $0x1] sm:$0x1]  ;;  %v265_v27 = vld [vmem:[%s517_s3 + $0x2] sm:$0x1] }
  0x1a   :  { %v218_v38 = vadd.f32 %v217_v28, %v139_v55  ;;  %v190_v40 = vadd.f32 %v189_v31, %v161_v7  ;;  %v299_v44 = vsel %vm151_vm6, 1.0, %v304_v0  ;;  %v244_v45 = vmax.f32 %v240_v32, %v238_v29 }
  0x1b   :  { %v245_v46 = vmax.f32 %v241_v33, %v239_v30  ;;  %v163_v47 = vsel %vm153_vm8, %v437_v61, 0.0  ;;  %v204_v48 = vadd.f32 %v298_v12, %v203_v37  ;;  %v247_v50 = vmax.f32 %v242_v34, %v243_v39 }
  0x1c   :  { %v219_v49 = vadd.f32 %v218_v38, %v140_v56  ;;  %v191_v51 = vadd.f32 %v190_v40, %v162_v35  ;;  %v300_v52 = vsel %vm152_vm7, 1.0, %v304_v0  ;;  %v164_v36 = vsel %vm154_vm9, %v439_v62, 0.0 }
  0x1d   :  { %v246_v53 = vmax.f32 %v244_v45, %v245_v46  ;;  %v205_v54 = vadd.f32 %v299_v44, %v204_v48  ;;  %v301_v60 = vsel %vm153_vm8, 1.0, %v304_v0  ;;  %v302_v41 = vsel %vm154_vm9, 1.0, %v304_v0 }
  0x1e   :  { %v220_v55 = vadd.f32 %v219_v49, %v431_v57  ;;  %v192_v59 = vadd.f32 %v191_v51, %v163_v47 }
  0x1f   :  { %v248_v56 = vmax.f32 %v246_v53, %v247_v50  ;;  %v206_v63 = vadd.f32 %v300_v52, %v205_v54 }
  0x20   :  { %v221_v1 = vadd.f32 %v220_v55, %v433_v58  ;;  %v193_v2 = vadd.f32 %v192_v59, %v164_v36 }
  0x21   :  { %v249_v3 = vrot.slane %v248_v56, 4  ;;  %v207_v4 = vadd.f32 %v301_v60, %v206_v63 }
  0x22   :  { %v222_v5 = vadd.f32 %v221_v1, %v437_v61  ;;  %v194_v6 = vrot.slane %v193_v2, 4  ;;  %v259_v61 = vld [vmem:[%s517_s3] sm:$0x1] }
  0x23   :  { %v250_v57 = vmax.f32 %v248_v56, %v249_v3  ;;  %v208_v7 = vadd.f32 %v302_v41, %v207_v4 }
  0x24   :  { %v223_v8 = vadd.f32 %v222_v5, %v439_v62  ;;  %v195_v42 = vadd.f32 %v194_v6, %v193_v2 }
  0x25   :  { %v251_v9 = vrot.slane %v250_v57, 2  ;;  %v209_v10 = vrot.slane %v208_v7, 4 }
  0x26   :  { %v224_v11 = vrot.slane %v223_v8, 4  ;;  %v196_v12 = vrot.slane %v195_v42, 2 }
  0x27   :  { %v252_v58 = vmax.f32 %v250_v57, %v251_v9  ;;  %v210_v13 = vadd.f32 %v209_v10, %v208_v7 }
  0x28   :  { %v225_v14 = vadd.f32 %v224_v11, %v223_v8  ;;  %v197_v15 = vadd.f32 %v196_v12, %v195_v42 }
  0x29   :  { %v253_v43 = vrot.slane %v252_v58, 1  ;;  %v211_v0 = vrot.slane %v210_v13, 2 }
  0x2a   :  { %v226_v16 = vrot.slane %v225_v14, 2  ;;  %v198_v17 = vrot.slane %v197_v15, 1 }
  0x2b   :  { %v254_v18 = vmax.f32 %v252_v58, %v253_v43  ;;  %v212_v19 = vadd.f32 %v211_v0, %v210_v13 }
  0x2c   :  { %v227_v62 = vadd.f32 %v226_v16, %v225_v14  ;;  %v199_v21 = vadd.f32 %v198_v17, %v197_v15 }
  0x2d   :  { %v258_v22 = vmax.f32 %v254_v18, 0.0  ;;  %v213_v23 = vrot.slane %v212_v19, 1 }
  0x2e   :  { %v228_v24 = vrot.slane %v227_v62, 1  ;;  %v260_v25 = vadd.f32 %v259_v61, %v199_v21 }
  0x2f   :  { %v269_v28 = vmax.f32 %v268_v20, %v258_v22  ;;  %v214_v29 = vadd.f32 %v213_v23, %v212_v19 }
  0x30   :  { %v229_v30 = vadd.f32 %v228_v24, %v227_v62  ;;  %261 = vst [vmem:[%s517_s3] sm:$0x1] %v260_v25 }
  0x31   :  { %v263_v31 = vadd.f32 %v262_v26, %v214_v29  ;;  %270 = vst [vmem:[%s517_s3 + $0x3] sm:$0x1] %v269_v28 }
  0x32   :  { %v266_v32 = vadd.f32 %v265_v27, %v229_v30 }
  0x33   :  { %264 = vst [vmem:[%s517_s3 + $0x1] sm:$0x1] %v263_v31 }
  0x34   :  { %267 = vst [vmem:[%s517_s3 + $0x2] sm:$0x1] %v266_v32 }

// kernel: weighted_mse_loss.3
= control target key start
LH: loop header
LB: loop body
LE: loop exit
PB: predicated region body
PF: predicated region fallthrough
CT: control target
= control target key end

     0   :  { %v192_v0 = vmov 0.0   ;;  %s267_s0 = inlined_call_operand.vmem [shape: f32[24,128], index: 0, kind: input, shape index: {}]   ;;  %s268_s1 = inlined_call_operand.vmem [shape: f32[24,128], index: 1, kind: input, shape index: {}]   ;;  %s269_s2 = inlined_call_operand.vmem [shape: f32[24,128], index: 2, kind: input, shape index: {}]   ;;  %s270_s3 = inlined_call_operand.vmem [shape: f32[4,128], index: 3, kind: output, shape index: {}]  }
   0x1   :  { %84 = vst [vmem:[%s270_s3] sm:$0xf] %v192_v0  ;;  %v85_v1 = vld [vmem:[%s267_s0] sm:$0xff]  ;;  %v86_v2 = vld [vmem:[%s267_s0 + $0x8] sm:$0xff]  ;;  %v87_v3 = vld [vmem:[%s267_s0 + $0x10] sm:$0xff] }
   0x2   :  { %v88_v4 = vld [vmem:[%s268_s1] sm:$0xff]  ;;  %v89_v5 = vld [vmem:[%s268_s1 + $0x8] sm:$0xff]  ;;  %v90_v6 = vld [vmem:[%s268_s1 + $0x10] sm:$0xff] }
   0x3   :  { %v91_v7 = vld [vmem:[%s269_s2] sm:$0xff]  ;;  %v92_v8 = vld [vmem:[%s269_s2 + $0x8] sm:$0xff]  ;;  %v93_v9 = vld [vmem:[%s269_s2 + $0x10] sm:$0xff]  ;;  %v94_v10 = vsub.f32 %v85_v1, %v88_v4  ;;  %v95_v11 = vsub.f32 %v86_v2, %v89_v5  ;;  %v96_v12 = vsub.f32 %v87_v3, %v90_v6 }
   0x4   :  { %vm103_vm0 = vcmp.gt.f32.partialorder %v91_v7, 0.0  ;;  %vm104_vm1 = vcmp.gt.f32.partialorder %v92_v8, 0.0  ;;  %vm105_vm2 = vcmp.gt.f32.partialorder %v93_v9, 0.0 }
   0x5   :  { %v97_v13 = vmul.f32 %v94_v10, %v91_v7  ;;  %v98_v14 = vmul.f32 %v95_v11, %v92_v8  ;;  %v99_v15 = vmul.f32 %v96_v12, %v93_v9  ;;  %v188_v16 = vsel %vm103_vm0, 1.0, %v192_v0 }
   0x6   :  { %v189_v17 = vsel %vm104_vm1, 1.0, %v192_v0  ;;  %v190_v18 = vsel %vm105_vm2, 1.0, %v192_v0 }
   0x7   :  { %v100_v19 = vmul.f32 %v97_v13, %v94_v10  ;;  %v101_v20 = vmul.f32 %v98_v14, %v95_v11  ;;  %v102_v21 = vmul.f32 %v99_v15, %v96_v12  ;;  %v123_v22 = vadd.f32 %v189_v17, %v188_v16 }
   0x8   :  { %v157_v50 = vld [vmem:[%s270_s3 + $0x1] sm:$0x1]  ;;  %v154_v57 = vld [vmem:[%s270_s3] sm:$0x1]  ;;  %v160_v59 = vld [vmem:[%s270_s3 + $0x2] sm:$0x1] }
   0x9   :  { %v106_v23 = vsel %vm103_vm0, %v100_v19, 0.0  ;;  %v107_v24 = vsel %vm104_vm1, %v101_v20, 0.0  ;;  %v108_v25 = vsel %vm105_vm2, %v102_v21, 0.0  ;;  %v124_v26 = vadd.f32 %v190_v18, %v123_v22  ;;  %v163_v2 = vld [vmem:[%s270_s3 + $0x3] sm:$0x1] }
   0xa   :  { %v115_v27 = vadd.f32 %v107_v24, %v106_v23  ;;  %v131_v28 = vadd.f32 %v101_v20, %v100_v19  ;;  %v139_v29 = vand.u32 2147483647, %v100_v19  ;;  %v140_v30 = vand.u32 2147483647, %v101_v20 }
   0xb   :  { %v125_v31 = vrot.slane %v124_v26, 4  ;;  %v141_v32 = vand.u32 2147483647, %v102_v21 }
   0xc   :  { %v116_v33 = vadd.f32 %v115_v27, %v108_v25  ;;  %v132_v34 = vadd.f32 %v131_v28, %v102_v21  ;;  %v142_v35 = vmax.f32 %v139_v29, %v140_v30 }
   0xd   :  { %v126_v36 = vadd.f32 %v125_v31, %v124_v26 }
   0xe   :  { %v117_v37 = vrot.slane %v116_v33, 4  ;;  %v133_v38 = vrot.slane %v132_v34, 4  ;;  %v143_v39 = vmax.f32 %v142_v35, %v141_v32 }
   0xf   :  { %v127_v40 = vrot.slane %v126_v36, 2 }
  0x10   :  { %v118_v41 = vadd.f32 %v117_v37, %v116_v33  ;;  %v134_v42 = vadd.f32 %v133_v38, %v132_v34  ;;  %v144_v43 = vrot.slane %v143_v39, 4 }
  0x11   :  { %v128_v44 = vadd.f32 %v127_v40, %v126_v36 }
  0x12   :  { %v119_v45 = vrot.slane %v118_v41, 2  ;;  %v135_v46 = vrot.slane %v134_v42, 2  ;;  %v145_v47 = vmax.f32 %v143_v39, %v144_v43 }
  0x13   :  { %v129_v48 = vrot.slane %v128_v44, 1 }
  0x14   :  { %v120_v49 = vadd.f32 %v119_v45, %v118_v41  ;;  %v136_v51 = vadd.f32 %v135_v46, %v134_v42  ;;  %v146_v52 = vrot.slane %v145_v47, 2 }
  0x15   :  { %v130_v53 = vadd.f32 %v129_v48, %v128_v44 }
  0x16   :  { %v121_v54 = vrot.slane %v120_v49, 1  ;;  %v137_v55 = vrot.slane %v136_v51, 1  ;;  %v147_v56 = vmax.f32 %v145_v47, %v146_v52 }
  0x17   :  { %v158_v58 = vadd.f32 %v157_v50, %v130_v53 }
  0x18   :  { %v122_v60 = vadd.f32 %v121_v54, %v120_v49  ;;  %v138_v61 = vadd.f32 %v137_v55, %v136_v51  ;;  %v148_v62 = vrot.slane %v147_v56, 1 }
  0x19   :  { %159 = vst [vmem:[%s270_s3 + $0x1] sm:$0x1] %v158_v58 }
  0x1a   :  { %v155_v63 = vadd.f32 %v154_v57, %v122_v60  ;;  %v161_v0 = vadd.f32 %v160_v59, %v138_v61  ;;  %v149_v1 = vmax.f32 %v147_v56, %v148_v62 }
  0x1c   :  { %156 = vst [vmem:[%s270_s3] sm:$0x1] %v155_v63  ;;  %v153_v3 = vmax.f32 %v149_v1, 0.0 }
  0x1d   :  { %162 = vst [vmem:[%s270_s3 + $0x2] sm:$0x1] %v161_v0 }
  0x1e   :  { %v164_v4 = vmax.f32 %v163_v2, %v153_v3 }
  0x20   :  { %165 = vst [vmem:[%s270_s3 + $0x3] sm:$0x1] %v164_v4 }

</bundles_post_ra>
